<compile_context>
chip_gen: v5e
topology: v5e:2x2
jax: 0.10.0
libtpu: 0.0.40
codegen_flags: <defaults>
</compile_context>

<pallas_src>
import jax
import jax.numpy as jnp
from jax.experimental import pallas as pl
from jax.experimental.pallas import tpu as pltpu


def _round_up(x: int, m: int) -> int:
    return ((x + m - 1) // m) * m


def _pick_tile(dim: int, max_tile: int, align: int) -> int:
    """Largest tile <= max_tile (multiple of `align`) that minimizes padding of `dim`."""
    max_tile = _round_up(max_tile, align)
    dim_r = _round_up(dim, align)
    if dim_r <= max_tile:
        return dim_r                      # one block covers the whole (aligned) dim
    best_t = max_tile
    best_pad = _round_up(dim, max_tile) - dim
    t = max_tile // 2
    while t >= align and best_pad > 0:
        t_r = _round_up(t, align)
        pad = _round_up(dim, t_r) - dim
        if pad < best_pad:                # strict '<': ties keep the larger tile
            best_t, best_pad = t_r, pad
        t //= 2
    return best_t


def _matmul_kernel_f32out(a_ref, b_ref, o_ref):
    # float32 output: accumulate directly into the VMEM-resident output block
    # (its block index ignores k, so it stays resident across the reduction).
    k = pl.program_id(2)
    prod = jnp.dot(a_ref[...], b_ref[...], preferred_element_type=jnp.float32)

    @pl.when(k == 0)
    def _():
        o_ref[...] = prod

    @pl.when(k != 0)
    def _():
        o_ref[...] += prod


def _matmul_kernel_acc(a_ref, b_ref, o_ref, acc_ref):
    # bf16 / f16 output: accumulate in an f32 VMEM scratch, cast on the last k step.
    k = pl.program_id(2)
    prod = jnp.dot(a_ref[...], b_ref[...], preferred_element_type=jnp.float32)

    @pl.when(k == 0)
    def _():
        acc_ref[...] = prod

    @pl.when(k != 0)
    def _():
        acc_ref[...] += prod

    @pl.when(k == pl.num_programs(2) - 1)
    def _():
        o_ref[...] = acc_ref[...].astype(o_ref.dtype)


def gemm_pallas(a, b, *, tm=None, tn=None, tk=None, cast_f32_to_bf16=False):
    """C = A @ B via a tiled Pallas TPU kernel (MXU, f32 accumulation).

    Matches torch.mm semantics for float32 / bfloat16 / float16 inputs.
    `cast_f32_to_bf16` is an OPT-IN speed path (changes numerics vs torch.mm).
    """
    if a.ndim != 2 or b.ndim != 2:
        raise ValueError("gemm_pallas expects 2D inputs (M,K) and (K,N)")
    M, K = a.shape
    K2, N = b.shape
    if K != K2:
        raise ValueError(f"inner dims mismatch: {K} vs {K2}")
    if a.dtype not in (jnp.float32, jnp.bfloat16, jnp.float16):
        raise NotImplementedError(f"GemmOp with dtype {a.dtype} is not implemented")
    out_dtype = a.dtype  # torch.mm: output dtype == input dtype

    # Opt-in MXU-bf16 fast path (off by default to preserve torch.mm f32 numerics).
    if cast_f32_to_bf16 and a.dtype == jnp.float32:
        a = a.astype(jnp.bfloat16)
        b = b.astype(jnp.bfloat16)

    in_dtype = a.dtype
    in_itemsize = jnp.dtype(in_dtype).itemsize
    out_itemsize = jnp.dtype(out_dtype).itemsize
    sub = 8 if in_dtype == jnp.float32 else 16   # dtype-aware sublane multiple

    # Large output tiles -> A/B reuse (HBM bytes per output elem ~ K*(1/tm + 1/tn)).
    if tm is None:
        tm = 512
    if tn is None:
        tn = 512
    if tk is None:
        tk = 512 if in_dtype == jnp.float32 else 1024

    # Adaptive clamping: minimize padding on ragged dims, keep lane dims 128-aligned,
    # sublane dim dtype-aligned, and tm >= 128 for MXU-friendly passes.
    tm = max(_pick_tile(M, tm, sub), 128)
    tn = _pick_tile(N, tn, 128)
    tk = _pick_tile(K, tk, 128)

    Mp, Np, Kp = _round_up(M, tm), _round_up(N, tn), _round_up(K, tk)

    # v7x megacore: make sure at least one "parallel" axis has >= 2 blocks when
    # possible, so small/medium GEMMs use both TensorCores.
    if Mp // tm == 1 and Np // tn == 1:
        if tn > 128:
            tn = _round_up(tn // 2, 128)
            Np = _round_up(N, tn)
        elif tm > 128:
            tm = max(_round_up(tm // 2, sub), 128)
            Mp = _round_up(M, tm)

    # jnp.pad materializes an HBM copy; adaptive tiles above keep this rare/small.
    a_p = a if (Mp, Kp) == (M, K) else jnp.pad(a, ((0, Mp - M), (0, Kp - K)))
    b_p = b if (Kp, Np) == (K, N) else jnp.pad(b, ((0, Kp - K), (0, Np - N)))

    gi, gj, gk = Mp // tm, Np // tn, Kp // tk

    use_acc = out_dtype != jnp.float32
    kernel = _matmul_kernel_acc if use_acc else _matmul_kernel_f32out
    scratch = [pltpu.VMEM((tm, tn), jnp.float32)] if use_acc else []

    # Scoped-VMEM request: actual pipelined footprint + headroom, capped well below
    # physical VMEM (v7x only has 64 MiB per TensorCore).
    footprint = (2 * (tm * tk + tk * tn) * in_itemsize   # double-buffered A and B
                 + 2 * tm * tn * out_itemsize            # double-buffered output
                 + (tm * tn * 4 if use_acc else 0))      # f32 accumulator scratch
    try:
        cap = int(0.75 * pltpu.get_tpu_info().vmem_capacity_bytes)
    except Exception:
        cap = 48 * 1024 * 1024
    vmem_limit = min(max(int(1.5 * footprint) + (4 << 20), 16 << 20), cap)

    out = pl.pallas_call(
        kernel,
        out_shape=jax.ShapeDtypeStruct((Mp, Np), out_dtype),
        grid_spec=pltpu.PrefetchScalarGridSpec(
            num_scalar_prefetch=0,
            grid=(gi, gj, gk),
            in_specs=[
                pl.BlockSpec((tm, tk), lambda i, j, k: (i, k)),
                pl.BlockSpec((tk, tn), lambda i, j, k: (k, j)),
            ],
            out_specs=pl.BlockSpec((tm, tn), lambda i, j, k: (i, j)),
            scratch_shapes=scratch,
        ),
        compiler_params=pltpu.CompilerParams(
            # M/N parallel (megacore sharding), K is the reduction.
            dimension_semantics=("parallel", "parallel", "arbitrary"),
            vmem_limit_bytes=vmem_limit,
        ),
        cost_estimate=pl.CostEstimate(
            flops=2 * M * N * K,
            transcendentals=0,
            # A is re-read once per N-tile, B once per M-tile, C written once.
            bytes_accessed=int(M * K * gj * in_itemsize
                               + K * N * gi * in_itemsize
                               + M * N * out_itemsize),
        ),
    )(a_p, b_p)

    if (Mp, Np) != (M, N):
        out = out[:M, :N]
    return out


if __name__ == "__main__":
    key = jax.random.PRNGKey(0)
    ks = jax.random.split(key, 6)

    # 1) Aligned float32 GEMM.
    M, K, N = 128, 256, 128
    a = jax.random.normal(ks[0], (M, K), dtype=jnp.float32)
    b = jax.random.normal(ks[1], (K, N), dtype=jnp.float32)
    c = gemm_pallas(a, b)
    jax.block_until_ready(c)
    c_ref = jnp.dot(a, b, preferred_element_type=jnp.float32)
    assert c.shape == (M, N) and c.dtype == jnp.float32
    assert jnp.allclose(c, c_ref, rtol=1e-3, atol=1e-2), "mismatch vs jnp.dot (f32 aligned)"

    # 2) Ragged float32 GEMM (exercises adaptive tiles + padding path).
    M2, K2, N2 = 72, 100, 48
    a2 = jax.random.normal(ks[2], (M2, K2), dtype=jnp.float32)
    b2 = jax.random.normal(ks[3], (K2, N2), dtype=jnp.float32)
    c2 = gemm_pallas(a2, b2)
    jax.block_until_ready(c2)
    c2_ref = jnp.dot(a2, b2, preferred_element_type=jnp.float32)
    assert c2.shape == (M2, N2)
    assert jnp.allclose(c2, c2_ref, rtol=1e-3, atol=1e-2), "mismatch vs jnp.dot (f32 ragged)"

    # 3) bfloat16 GEMM (f32 accumulator scratch + final-k cast path).
    M3, K3, N3 = 128, 512, 256
    a3 = jax.random.normal(ks[4], (M3, K3), dtype=jnp.float32).astype(jnp.bfloat16)
    b3 = jax.random.normal(ks[5], (K3, N3), dtype=jnp.float32).astype(jnp.bfloat16)
    c3 = gemm_pallas(a3, b3)
    jax.block_until_ready(c3)
    c3_ref = jnp.dot(a3.astype(jnp.float32), b3.astype(jnp.float32))
    assert c3.shape == (M3, N3) and c3.dtype == jnp.bfloat16
    assert jnp.allclose(c3.astype(jnp.float32), c3_ref, rtol=2e-2, atol=2e-1), \
        "mismatch vs f32 reference (bf16)"

    print("KERNEL_OK")
</pallas_src>

<mosaic_0001>
module attributes {stable_mosaic.version = 11 : i64} {
  func.func @_matmul_kernel_f32out(%arg0: i32, %arg1: i32, %arg2: i32, %arg3: memref<128x256xf32, #tpu.memory_space<vmem>>, %arg4: memref<256x128xf32, #tpu.memory_space<vmem>>, %arg5: memref<128x128xf32, #tpu.memory_space<vmem>>) attributes {dimension_semantics = [#tpu.dimension_semantics<parallel>, #tpu.dimension_semantics<parallel>, #tpu.dimension_semantics<arbitrary>], iteration_bounds = array<i64: 1, 1, 1>, scalar_prefetch = 0 : i64, scratch_operands = 0 : i64, tpu.core_type = #tpu.core_type<tc>, window_params = [{transform_indices = @transform_0, window_bounds = array<i64: 128, 256>}, {transform_indices = @transform_1, window_bounds = array<i64: 256, 128>}, {transform_indices = @transform_2, window_bounds = array<i64: 128, 128>}]} {
    %c0 = arith.constant 0 : index
    %c0_0 = arith.constant 0 : index
    %0 = vector.load %arg3[%c0, %c0_0] : memref<128x256xf32, #tpu.memory_space<vmem>>, vector<128x256xf32>
    %c0_1 = arith.constant 0 : index
    %c0_2 = arith.constant 0 : index
    %1 = vector.load %arg4[%c0_1, %c0_2] : memref<256x128xf32, #tpu.memory_space<vmem>>, vector<256x128xf32>
    %cst = arith.constant dense<0.000000e+00> : vector<128x128xf32>
    %2 = tpu.matmul %0, %1, %cst {dimension_numbers = #tpu.dot_dimension_numbers<[1], [0], [0], [1], [0, 0, 1, 1], [], []>} : vector<128x256xf32>, vector<256x128xf32>, vector<128x128xf32> -> vector<128x128xf32>
    %c0_i32 = arith.constant 0 : i32
    %3 = arith.cmpi eq, %arg2, %c0_i32 : i32
    %4 = arith.extui %3 : i1 to i32
    %c0_i32_3 = arith.constant 0 : i32
    %5 = arith.cmpi ne, %4, %c0_i32_3 : i32
    scf.if %5 {
      %c0_6 = arith.constant 0 : index
      %c0_7 = arith.constant 0 : index
      %9 = vector.load %arg5[%c0_6, %c0_7] : memref<128x128xf32, #tpu.memory_space<vmem>>, vector<128x128xf32>
      tpu.vector_store %arg5[%c0_6, %c0_7], %2 {strides = array<i32>} : memref<128x128xf32, #tpu.memory_space<vmem>>, vector<128x128xf32>,
    } else {
    }
    %c0_i32_4 = arith.constant 0 : i32
    %6 = arith.cmpi ne, %arg2, %c0_i32_4 : i32
    %7 = arith.extui %6 : i1 to i32
    %c0_i32_5 = arith.constant 0 : i32
    %8 = arith.cmpi ne, %7, %c0_i32_5 : i32
    scf.if %8 {
      %c0_6 = arith.constant 0 : index
      %c0_7 = arith.constant 0 : index
      %9 = vector.load %arg5[%c0_6, %c0_7] : memref<128x128xf32, #tpu.memory_space<vmem>>, vector<128x128xf32>
      %10 = arith.addf %9, %2 : vector<128x128xf32>
      %c0_8 = arith.constant 0 : index
      %c0_9 = arith.constant 0 : index
      %11 = vector.load %arg5[%c0_8, %c0_9] : memref<128x128xf32, #tpu.memory_space<vmem>>, vector<128x128xf32>
      tpu.vector_store %arg5[%c0_8, %c0_9], %10 {strides = array<i32>} : memref<128x128xf32, #tpu.memory_space<vmem>>, vector<128x128xf32>,
    } else {
    }
    return
  }
  func.func @transform_0(%arg0: i32, %arg1: i32, %arg2: i32) -> (i32, i32) {
    %c0_i32 = arith.constant 0 : i32
    return %arg0, %arg2 : i32, i32
  }
  func.func @transform_1(%arg0: i32, %arg1: i32, %arg2: i32) -> (i32, i32) {
    %c0_i32 = arith.constant 0 : i32
    return %arg2, %arg1 : i32, i32
  }
  func.func @transform_2(%arg0: i32, %arg1: i32, %arg2: i32) -> (i32, i32) {
    %c0_i32 = arith.constant 0 : i32
    return %arg0, %arg1 : i32, i32
  }
}

</mosaic_0001>

<bundles_post_ra>
// kernel: tpu_custom_call.1
= control target key start
LH: loop header
LB: loop body
LE: loop exit
PB: predicated region body
PF: predicated region fallthrough
CT: control target
= control target key end

     0   :  { %7 = vsyncpa [#allocation3], 0  ;;  %s484_s0 = inlined_call_operand.hbm [shape: f32[128,256], index: 0, kind: input, shape index: {}]   ;;  %s485_s1 = inlined_call_operand.hbm [shape: f32[256,128], index: 1, kind: input, shape index: {}]   ;;  %s486_s2 = inlined_call_operand.hbm [shape: f32[128,128], index: 2, kind: output, shape index: {}]  }
   0x1   :  { %8 = vsyncpa [#allocation6], 0 }
   0x2   :  { %9 = vsyncpa [#allocation4], 0  ;;  %s14_s11 = sshll.u32 %s484_s0, 4  ;;  %s447_s12 = smov [#allocation2]   ;;  %s15_s11 = int_to_ptr.hbm [resolvable:$true] %s14_s11 }
   0x3   :  { %s16_s13 = sshll.u32 %s447_s12, 4  ;;  %s27_s16 = sshll.u32 %s485_s1, 4  ;;  %s17_s13 = int_to_ptr.vmem [resolvable:$true] %s16_s13  ;;  %s28_s16 = int_to_ptr.hbm [resolvable:$true] %s27_s16 }
   0x4   :  { %s448_s17 = smov 256   ;;  %s449_s18 = smov 16  }
   0x5   :  { %22 = dma.hbm_to_vmem [thread:$0]  %s15_s11, 4096, %s17_s13, [#allocation3], %s448_s17, %s448_s17, %s449_s18  }
   0x6   :  { %s450_s19 = smov [#allocation5]   ;;  %s451_s21 = smov 128  }
   0x7   :  { %s29_s20 = sshll.u32 %s450_s19, 4  ;;  %s452_s22 = smov 8   ;;  %s30_s20 = int_to_ptr.vmem [resolvable:$true] %s29_s20 }
   0x8   :  { %35 = dma.hbm_to_vmem [thread:$0]  %s28_s16, 4096, %s30_s20, [#allocation6], %s451_s21, %s451_s21, %s452_s22  }
   0x9   :  { %441 = dma.done.wait [#allocation3], 4096  }
   0xa   :  { %442 = vsyncadd [#allocation3], 4294963200 }
   0xb   :  { %443 = dma.done.wait [#allocation6], 4096  }
   0xc   :  { %444 = vsyncadd [#allocation6], 4294963200  ;;  %v91_v0 = vld [vmem:[#allocation5 + $0x78] sm:$0xff]  ;;  %v90_v2 = vld [vmem:[#allocation5 + $0x70] sm:$0xff]  ;;  %s453_s0 = smov [#allocation7]   ;;  %s316_s25 = sshll.u32 %s486_s2, 4  ;;  %s317_s25 = int_to_ptr.hbm [resolvable:$true] %s316_s25 }
   0xd   :  { %v107_v1 = vld [vmem:[#allocation5 + $0xf8] sm:$0xff]  ;;  %330 = vmatpush.msra.mxu2 %v91_v0  ;;  %v106_v3 = vld [vmem:[#allocation5 + $0xf0] sm:$0xff]  ;;  %v89_v4 = vld [vmem:[#allocation5 + $0x68] sm:$0xff]  ;;  %108 = vmatpush.msra.mxu0 %v91_v0  ;;  %s314_s1 = sshll.u32 %s453_s0, 4  ;;  %s315_s1 = int_to_ptr.vmem [resolvable:$true] %s314_s1 }
   0xe   :  { %346 = vmatpush.msra.mxu3 %v107_v1  ;;  %v105_v5 = vld [vmem:[#allocation5 + $0xe8] sm:$0xff]  ;;  %173 = vmatpush.msra.mxu1 %v107_v1  ;;  %v88_v6 = vld [vmem:[#allocation5 + $0x60] sm:$0xff]  ;;  %v87_v8 = vld [vmem:[#allocation5 + $0x58] sm:$0xff] }
   0xf   :  { %331 = vmatpush.msra.mxu2 %v90_v2  ;;  %v104_v7 = vld [vmem:[#allocation5 + $0xe0] sm:$0xff]  ;;  %109 = vmatpush.msra.mxu0 %v90_v2  ;;  %v103_v9 = vld [vmem:[#allocation5 + $0xd8] sm:$0xff]  ;;  %v86_v10 = vld [vmem:[#allocation5 + $0x50] sm:$0xff] }
  0x10   :  { %347 = vmatpush.msra.mxu3 %v106_v3  ;;  %174 = vmatpush.msra.mxu1 %v106_v3  ;;  %v102_v11 = vld [vmem:[#allocation5 + $0xd0] sm:$0xff]  ;;  %v85_v12 = vld [vmem:[#allocation5 + $0x48] sm:$0xff]  ;;  %v84_v14 = vld [vmem:[#allocation5 + $0x40] sm:$0xff] }
  0x11   :  { %332 = vmatpush.msra.mxu2 %v89_v4  ;;  %110 = vmatpush.msra.mxu0 %v89_v4  ;;  %v101_v13 = vld [vmem:[#allocation5 + $0xc8] sm:$0xff]  ;;  %v100_v15 = vld [vmem:[#allocation5 + $0xc0] sm:$0xff]  ;;  %v83_v16 = vld [vmem:[#allocation5 + $0x38] sm:$0xff] }
  0x12   :  { %348 = vmatpush.msra.mxu3 %v105_v5  ;;  %175 = vmatpush.msra.mxu1 %v105_v5  ;;  %v99_v17 = vld [vmem:[#allocation5 + $0xb8] sm:$0xff]  ;;  %v82_v18 = vld [vmem:[#allocation5 + $0x30] sm:$0xff]  ;;  %v81_v20 = vld [vmem:[#allocation5 + $0x28] sm:$0xff] }
  0x13   :  { %333 = vmatpush.msra.mxu2 %v88_v6  ;;  %111 = vmatpush.msra.mxu0 %v88_v6  ;;  %v98_v19 = vld [vmem:[#allocation5 + $0xb0] sm:$0xff]  ;;  %v97_v21 = vld [vmem:[#allocation5 + $0xa8] sm:$0xff]  ;;  %v80_v22 = vld [vmem:[#allocation5 + $0x20] sm:$0xff] }
  0x14   :  { %349 = vmatpush.msra.mxu3 %v104_v7  ;;  %176 = vmatpush.msra.mxu1 %v104_v7  ;;  %v96_v23 = vld [vmem:[#allocation5 + $0xa0] sm:$0xff]  ;;  %v79_v24 = vld [vmem:[#allocation5 + $0x18] sm:$0xff]  ;;  %v78_v26 = vld [vmem:[#allocation5 + $0x10] sm:$0xff] }
  0x15   :  { %334 = vmatpush.msra.mxu2 %v87_v8  ;;  %112 = vmatpush.msra.mxu0 %v87_v8  ;;  %v95_v25 = vld [vmem:[#allocation5 + $0x98] sm:$0xff]  ;;  %v94_v27 = vld [vmem:[#allocation5 + $0x90] sm:$0xff]  ;;  %v77_v28 = vld [vmem:[#allocation5 + $0x8] sm:$0xff] }
  0x16   :  { %350 = vmatpush.msra.mxu3 %v103_v9  ;;  %177 = vmatpush.msra.mxu1 %v103_v9  ;;  %v93_v29 = vld [vmem:[#allocation5 + $0x88] sm:$0xff]  ;;  %v76_v30 = vld [vmem:[#allocation5] sm:$0xff]  ;;  %v62_v36 = vld [vmem:[#allocation2 + $0x90] sm:$0xff] }
  0x17   :  { %335 = vmatpush.msra.mxu2 %v86_v10  ;;  %113 = vmatpush.msra.mxu0 %v86_v10  ;;  %v92_v31 = vld [vmem:[#allocation5 + $0x80] sm:$0xff]  ;;  %v61_v33 = vld [vmem:[#allocation2 + $0x88] sm:$0xff]  ;;  %v63_v37 = vld [vmem:[#allocation2 + $0x98] sm:$0xff] }
  0x18   :  { %351 = vmatpush.msra.mxu3 %v102_v11  ;;  %178 = vmatpush.msra.mxu1 %v102_v11  ;;  %v60_v32 = vld [vmem:[#allocation2 + $0x80] sm:$0xff]  ;;  %v45_v35 = vld [vmem:[#allocation2 + $0x8] sm:$0xff]  ;;  %v46_v38 = vld [vmem:[#allocation2 + $0x10] sm:$0xff] }
  0x19   :  { %336 = vmatpush.msra.mxu2 %v85_v12  ;;  %114 = vmatpush.msra.mxu0 %v85_v12  ;;  %v44_v34 = vld [vmem:[#allocation2] sm:$0xff]  ;;  %v47_v39 = vld [vmem:[#allocation2 + $0x18] sm:$0xff]  ;;  %v65_v41 = vld [vmem:[#allocation2 + $0xa8] sm:$0xff] }
  0x1a   :  { %352 = vmatpush.msra.mxu3 %v101_v13  ;;  %179 = vmatpush.msra.mxu1 %v101_v13  ;;  %v64_v40 = vld [vmem:[#allocation2 + $0xa0] sm:$0xff]  ;;  %v49_v43 = vld [vmem:[#allocation2 + $0x28] sm:$0xff]  ;;  %v66_v44 = vld [vmem:[#allocation2 + $0xb0] sm:$0xff] }
  0x1b   :  { %337 = vmatpush.msra.mxu2 %v84_v14  ;;  %115 = vmatpush.msra.mxu0 %v84_v14  ;;  %v48_v42 = vld [vmem:[#allocation2 + $0x20] sm:$0xff]  ;;  %v67_v45 = vld [vmem:[#allocation2 + $0xb8] sm:$0xff]  ;;  %v50_v46 = vld [vmem:[#allocation2 + $0x30] sm:$0xff] }
  0x1c   :  { %353 = vmatpush.msra.mxu3 %v100_v15  ;;  %180 = vmatpush.msra.mxu1 %v100_v15  ;;  %v51_v47 = vld [vmem:[#allocation2 + $0x38] sm:$0xff]  ;;  %v68_v48 = vld [vmem:[#allocation2 + $0xc0] sm:$0xff]  ;;  %v69_v49 = vld [vmem:[#allocation2 + $0xc8] sm:$0xff] }
  0x1d   :  { %338 = vmatpush.msra.mxu2 %v83_v16  ;;  %116 = vmatpush.msra.mxu0 %v83_v16  ;;  %v52_v50 = vld [vmem:[#allocation2 + $0x40] sm:$0xff]  ;;  %v53_v51 = vld [vmem:[#allocation2 + $0x48] sm:$0xff]  ;;  %v70_v52 = vld [vmem:[#allocation2 + $0xd0] sm:$0xff] }
  0x1e   :  { %354 = vmatpush.msra.mxu3 %v99_v17  ;;  %181 = vmatpush.msra.mxu1 %v99_v17  ;;  %v71_v53 = vld [vmem:[#allocation2 + $0xd8] sm:$0xff]  ;;  %v54_v54 = vld [vmem:[#allocation2 + $0x50] sm:$0xff]  ;;  %v72_v56 = vld [vmem:[#allocation2 + $0xe0] sm:$0xff] }
  0x1f   :  { %339 = vmatpush.msra.mxu2 %v82_v18  ;;  %117 = vmatpush.msra.mxu0 %v82_v18  ;;  %v55_v55 = vld [vmem:[#allocation2 + $0x58] sm:$0xff]  ;;  %v73_v57 = vld [vmem:[#allocation2 + $0xe8] sm:$0xff]  ;;  %v56_v58 = vld [vmem:[#allocation2 + $0x60] sm:$0xff] }
  0x20   :  { %355 = vmatpush.msra.mxu3 %v98_v19  ;;  %182 = vmatpush.msra.mxu1 %v98_v19  ;;  %v57_v59 = vld [vmem:[#allocation2 + $0x68] sm:$0xff]  ;;  %v74_v60 = vld [vmem:[#allocation2 + $0xf0] sm:$0xff]  ;;  %v75_v61 = vld [vmem:[#allocation2 + $0xf8] sm:$0xff] }
  0x21   :  { %340 = vmatpush.msra.mxu2 %v81_v20  ;;  %118 = vmatpush.msra.mxu0 %v81_v20  ;;  %v58_v62 = vld [vmem:[#allocation2 + $0x70] sm:$0xff]  ;;  %v59_v63 = vld [vmem:[#allocation2 + $0x78] sm:$0xff] }
  0x22   :  { %356 = vmatpush.msra.mxu3 %v97_v21  ;;  %183 = vmatpush.msra.mxu1 %v97_v21 }
  0x23   :  { %341 = vmatpush.msra.mxu2 %v80_v22  ;;  %119 = vmatpush.msra.mxu0 %v80_v22 }
  0x24   :  { %357 = vmatpush.msra.mxu3 %v96_v23  ;;  %184 = vmatpush.msra.mxu1 %v96_v23 }
  0x25   :  { %342 = vmatpush.msra.mxu2 %v79_v24  ;;  %120 = vmatpush.msra.mxu0 %v79_v24 }
  0x26   :  { %358 = vmatpush.msra.mxu3 %v95_v25  ;;  %185 = vmatpush.msra.mxu1 %v95_v25 }
  0x27   :  { %343 = vmatpush.msra.mxu2 %v78_v26  ;;  %121 = vmatpush.msra.mxu0 %v78_v26 }
  0x28   :  { %359 = vmatpush.msra.mxu3 %v94_v27  ;;  %186 = vmatpush.msra.mxu1 %v94_v27 }
  0x29   :  { %344 = vmatpush.msra.mxu2 %v77_v28  ;;  %122 = vmatpush.msra.mxu0 %v77_v28 }
  0x2a   :  { %360 = vmatpush.msra.mxu3 %v93_v29  ;;  %187 = vmatpush.msra.mxu1 %v93_v29 }
  0x2b   :  { %345 = vmatpush.msra.mxu2 %v76_v30  ;;  %123 = vmatpush.msra.mxu0 %v76_v30 }
  0x2c   :  { %361 = vmatpush.msra.mxu3 %v92_v31  ;;  %148 = vmatmul.f32.vlgmr.msra.gmra.mxu2 %v60_v32 }
  0x2d   :  { %213 = vmatmul.f32.vlgmr.msra.gmra.mxu3 %v61_v33  ;;  %188 = vmatpush.msra.mxu1 %v92_v31 }
  0x2e   :  { %124 = vmatmul.f32.vlgmr.msra.gmra.mxu0 %v44_v34  ;;  %189 = vmatmul.f32.vlgmr.msra.gmra.mxu1 %v45_v35 }
  0x34   :  { %151 = vmatmul.f32.gmra.mxu2 %v62_v36 }
  0x35   :  { %216 = vmatmul.f32.gmra.mxu3 %v63_v37 }
  0x36   :  { %127 = vmatmul.f32.gmra.mxu0 %v46_v38  ;;  %192 = vmatmul.f32.gmra.mxu1 %v47_v39 }
  0x3c   :  { %154 = vmatmul.f32.gmra.mxu2 %v64_v40 }
  0x3d   :  { %219 = vmatmul.f32.gmra.mxu3 %v65_v41 }
  0x3e   :  { %130 = vmatmul.f32.gmra.mxu0 %v48_v42  ;;  %195 = vmatmul.f32.gmra.mxu1 %v49_v43 }
  0x44   :  { %157 = vmatmul.f32.gmra.mxu2 %v66_v44 }
  0x45   :  { %222 = vmatmul.f32.gmra.mxu3 %v67_v45 }
  0x46   :  { %133 = vmatmul.f32.gmra.mxu0 %v50_v46  ;;  %198 = vmatmul.f32.gmra.mxu1 %v51_v47 }
  0x4c   :  { %160 = vmatmul.f32.gmra.mxu2 %v68_v48 }
  0x4d   :  { %225 = vmatmul.f32.gmra.mxu3 %v69_v49 }
  0x4e   :  { %136 = vmatmul.f32.gmra.mxu0 %v52_v50  ;;  %201 = vmatmul.f32.gmra.mxu1 %v53_v51 }
  0x54   :  { %163 = vmatmul.f32.gmra.mxu2 %v70_v52 }
  0x55   :  { %228 = vmatmul.f32.gmra.mxu3 %v71_v53 }
  0x56   :  { %139 = vmatmul.f32.gmra.mxu0 %v54_v54  ;;  %204 = vmatmul.f32.gmra.mxu1 %v55_v55 }
  0x5c   :  { %166 = vmatmul.f32.gmra.mxu2 %v72_v56 }
  0x5d   :  { %231 = vmatmul.f32.gmra.mxu3 %v73_v57 }
  0x5e   :  { %142 = vmatmul.f32.gmra.mxu0 %v56_v58  ;;  %207 = vmatmul.f32.gmra.mxu1 %v57_v59 }
  0x64   :  { %169 = vmatmul.f32.gmra.mxu2 %v74_v60 }
  0x65   :  { %234 = vmatmul.f32.gmra.mxu3 %v75_v61 }
  0x66   :  { %145 = vmatmul.f32.gmra.mxu0 %v58_v62  ;;  %210 = vmatmul.f32.gmra.mxu1 %v59_v63 }
  0xab   :  { %v125_v0 = vpop.f32.mrf.mxu0  ;;  %v190_v1 = vpop.f32.mrf.mxu1 }
  0xac   :  { %v191_v2 = vadd.f32 %v190_v1, %v125_v0 }
  0xae   :  { %242 = vst [vmem:[#allocation7] sm:$0xff] %v191_v2 }
  0xaf   :  { %v149_v3 = vpop.f32.mrf.mxu2 }
  0xb0   :  { %v214_v4 = vpop.f32.mrf.mxu3 }
  0xb1   :  { %v215_v5 = vadd.f32 %v214_v4, %v149_v3 }
  0xb3   :  { %250 = vst [vmem:[#allocation7 + $0x40] sm:$0xff] %v215_v5  ;;  %v128_v6 = vpop.f32.mrf.mxu0  ;;  %v193_v7 = vpop.f32.mrf.mxu1 }
  0xb4   :  { %v194_v8 = vadd.f32 %v193_v7, %v128_v6 }
  0xb6   :  { %243 = vst [vmem:[#allocation7 + $0x8] sm:$0xff] %v194_v8 }
  0xb7   :  { %v152_v9 = vpop.f32.mrf.mxu2 }
  0xb8   :  { %v217_v10 = vpop.f32.mrf.mxu3 }
  0xb9   :  { %v218_v11 = vadd.f32 %v217_v10, %v152_v9 }
  0xbb   :  { %251 = vst [vmem:[#allocation7 + $0x48] sm:$0xff] %v218_v11  ;;  %v131_v12 = vpop.f32.mrf.mxu0  ;;  %v196_v13 = vpop.f32.mrf.mxu1 }
  0xbc   :  { %v197_v14 = vadd.f32 %v196_v13, %v131_v12 }
  0xbe   :  { %244 = vst [vmem:[#allocation7 + $0x10] sm:$0xff] %v197_v14 }
  0xbf   :  { %v155_v15 = vpop.f32.mrf.mxu2 }
  0xc0   :  { %v220_v16 = vpop.f32.mrf.mxu3 }
  0xc1   :  { %v221_v17 = vadd.f32 %v220_v16, %v155_v15 }
  0xc3   :  { %252 = vst [vmem:[#allocation7 + $0x50] sm:$0xff] %v221_v17  ;;  %v134_v18 = vpop.f32.mrf.mxu0  ;;  %v199_v19 = vpop.f32.mrf.mxu1 }
  0xc4   :  { %v200_v20 = vadd.f32 %v199_v19, %v134_v18 }
  0xc6   :  { %245 = vst [vmem:[#allocation7 + $0x18] sm:$0xff] %v200_v20 }
  0xc7   :  { %v158_v21 = vpop.f32.mrf.mxu2 }
  0xc8   :  { %v223_v22 = vpop.f32.mrf.mxu3 }
  0xc9   :  { %v224_v23 = vadd.f32 %v223_v22, %v158_v21 }
  0xcb   :  { %253 = vst [vmem:[#allocation7 + $0x58] sm:$0xff] %v224_v23  ;;  %v137_v24 = vpop.f32.mrf.mxu0  ;;  %v202_v25 = vpop.f32.mrf.mxu1 }
  0xcc   :  { %v203_v26 = vadd.f32 %v202_v25, %v137_v24 }
  0xce   :  { %246 = vst [vmem:[#allocation7 + $0x20] sm:$0xff] %v203_v26 }
  0xcf   :  { %v161_v27 = vpop.f32.mrf.mxu2 }
  0xd0   :  { %v226_v28 = vpop.f32.mrf.mxu3 }
  0xd1   :  { %v227_v29 = vadd.f32 %v226_v28, %v161_v27 }
  0xd3   :  { %254 = vst [vmem:[#allocation7 + $0x60] sm:$0xff] %v227_v29  ;;  %v140_v30 = vpop.f32.mrf.mxu0  ;;  %v205_v31 = vpop.f32.mrf.mxu1 }
  0xd4   :  { %v206_v32 = vadd.f32 %v205_v31, %v140_v30 }
  0xd6   :  { %247 = vst [vmem:[#allocation7 + $0x28] sm:$0xff] %v206_v32 }
  0xd7   :  { %v164_v33 = vpop.f32.mrf.mxu2 }
  0xd8   :  { %v229_v34 = vpop.f32.mrf.mxu3 }
  0xd9   :  { %v230_v35 = vadd.f32 %v229_v34, %v164_v33 }
  0xdb   :  { %255 = vst [vmem:[#allocation7 + $0x68] sm:$0xff] %v230_v35  ;;  %v143_v36 = vpop.f32.mrf.mxu0  ;;  %v208_v37 = vpop.f32.mrf.mxu1 }
  0xdc   :  { %v209_v38 = vadd.f32 %v208_v37, %v143_v36 }
  0xde   :  { %248 = vst [vmem:[#allocation7 + $0x30] sm:$0xff] %v209_v38 }
  0xdf   :  { %v167_v39 = vpop.f32.mrf.mxu2 }
  0xe0   :  { %v232_v40 = vpop.f32.mrf.mxu3 }
  0xe1   :  { %v233_v41 = vadd.f32 %v232_v40, %v167_v39 }
  0xe3   :  { %256 = vst [vmem:[#allocation7 + $0x70] sm:$0xff] %v233_v41  ;;  %v146_v42 = vpop.f32.mrf.mxu0  ;;  %v211_v43 = vpop.f32.mrf.mxu1 }
  0xe4   :  { %v212_v44 = vadd.f32 %v211_v43, %v146_v42 }
  0xe6   :  { %249 = vst [vmem:[#allocation7 + $0x38] sm:$0xff] %v212_v44 }
  0xe7   :  { %v170_v45 = vpop.f32.mrf.mxu2 }
  0xe8   :  { %v235_v46 = vpop.f32.mrf.mxu3 }
  0xe9   :  { %v236_v47 = vadd.f32 %v235_v46, %v170_v45 }
  0xeb   :  { %257 = vst [vmem:[#allocation7 + $0x78] sm:$0xff] %v236_v47 }
  0xec   :  { %322 = dma.vmem_to_hbm [thread:$0]  %s315_s1, 2048, %s317_s25, [#allocation4], %s451_s21, %s451_s21, %s452_s22  }
  0xed   :  { %445 = dma.done.wait [#allocation4], 2048  }
  0xee   :  { %446 = vsyncadd [#allocation4], 4294965248 }
  0xef   :  { %327 = vsyncpa [#allocation3], 1 }
  0xf0   :  { %328 = vsyncpa [#allocation6], 1 }
  0xf1   :  { %329 = vsyncpa [#allocation4], 1 }

</bundles_post_ra>
